<compile_context>
chip_gen: v7x
topology: tpu7x:2x2x1
jax: 0.10.0
libtpu: 0.0.40
codegen_flags: <defaults>
</compile_context>

<pallas_src>
import functools

import jax
import jax.numpy as jnp
from jax import lax
from jax.experimental import pallas as pl
from jax.experimental.pallas import tpu as pltpu


def _round_up(n, m):
    return ((n + m - 1) // m) * m


def _cdiv(a, b):
    return -(-a // b)


# ----------------------------------------------------------------------------
# Kernel
# ----------------------------------------------------------------------------
def _make_picnn_kernel(num_layer, hidden_z, input_dim, kp, h_full_activation):
    """Fused PICNN forward: one aligned 128-wide MXU push per layer."""

    def kernel(a_ref, w_ref, wf_ref, out_ref):
        tb = a_ref.shape[0]
        # Lane mask for the y pass-through columns (hoisted out of the loop).
        col = lax.broadcasted_iota(jnp.int32, (1, kp), 1)
        is_y = jnp.broadcast_to(
            (col >= hidden_z) & (col < hidden_z + input_dim), (tb, kp))

        a = a_ref[...]                                   # bf16 [tb, KP]
        for l in range(num_layer):                       # static unroll
            o = jnp.dot(a, w_ref[l], preferred_element_type=jnp.float32)
            # y columns keep the raw (identity) result; everything else ReLU.
            a = jnp.where(is_y, o, jnp.maximum(o, 0.0)).astype(jnp.bfloat16)

        z = jnp.dot(a, wf_ref[...], preferred_element_type=jnp.float32)
        if h_full_activation:
            z = jnp.maximum(z, 0.0)
        out_ref[...] = z.astype(out_ref.dtype)

    return kernel


# ----------------------------------------------------------------------------
# Parameter construction (deterministic, mimics nn.Linear default init)
# ----------------------------------------------------------------------------
def _linear_params(key, in_f, out_f, bias):
    bound = 1.0 / jnp.sqrt(jnp.float32(in_f))
    kw, kb = jax.random.split(key)
    W = jax.random.uniform(kw, (in_f, out_f), jnp.float32, -bound, bound)
    if bias:
        b = jax.random.uniform(kb, (1, out_f), jnp.float32, -bound, bound)
        return W, b
    return (W,)


def make_params(key, input_dim, num_distribution, hidden_u, hidden_z, num_layer):
    keys = jax.random.split(key, 4 + 4 * (num_layer - 1) + 4)
    ki = iter(keys)
    params = []
    # layer 1
    Wy1, by1 = _linear_params(next(ki), input_dim, hidden_z, True)
    (Wu1,) = _linear_params(next(ki), num_distribution, hidden_z, False)
    Wt1, bt1 = _linear_params(next(ki), num_distribution, hidden_u, True)
    params += [Wy1, by1, Wu1, Wt1, bt1]
    # layers 2 .. num_layer
    for _ in range(num_layer - 1):
        (Wz,) = _linear_params(next(ki), hidden_z, hidden_z, False)
        Wy, by = _linear_params(next(ki), input_dim, hidden_z, True)
        (Wu,) = _linear_params(next(ki), hidden_u, hidden_z, False)
        Wt, bt = _linear_params(next(ki), hidden_u, hidden_u, True)
        params += [Wz, Wy, by, Wu, Wt, bt]
    # final
    (Wzf,) = _linear_params(next(ki), hidden_z, input_dim, False)
    Wyf, byf = _linear_params(next(ki), input_dim, input_dim, True)
    (Wuf,) = _linear_params(next(ki), hidden_u, input_dim, False)
    params += [Wzf, Wyf, byf, Wuf]
    return params


def _dims(input_dim, num_distribution, hidden_u, hidden_z):
    U = max(hidden_u, num_distribution)        # width of the u slot
    K = hidden_z + input_dim + U               # [ z | y | u ]
    Ka = K + 1                                 # + ones column (bias folding)
    KP = _round_up(Ka, 128)                    # lane-aligned activation width
    NOUT = _round_up(input_dim, 128)           # lane-dense output width
    return U, K, Ka, KP, NOUT


# ----------------------------------------------------------------------------
# Pack raw per-layer params into the fused, 128-padded, bf16 kernel layout.
# ----------------------------------------------------------------------------
def pack_params(params, *, input_dim, num_distribution, hidden_u, hidden_z,
                num_layer):
    nd, hu, hz = num_distribution, hidden_u, hidden_z
    U, K, Ka, KP, NOUT = _dims(input_dim, nd, hu, hz)

    p = list(params)
    idx = 0

    def nxt():
        nonlocal idx
        r = p[idx]
        idx += 1
        return r

    r_z, r_y, r_u, r_1 = 0, hz, hz + input_dim, K
    c_z, c_y, c_u, c_1 = 0, hz, hz + input_dim, K

    def fused_layer(Wz, Wy, by, Wu, Wt, bt):
        W = jnp.zeros((KP, KP), jnp.float32)
        # z_new columns
        if Wz is not None:
            W = W.at[r_z:r_z + hz, c_z:c_z + hz].set(Wz)
        W = W.at[r_y:r_y + input_dim, c_z:c_z + hz].set(Wy)
        ku = Wu.shape[0]                 # nd for layer 1, hu for hidden layers
        W = W.at[r_u:r_u + ku, c_z:c_z + hz].set(Wu)
        W = W.at[r_1, c_z:c_z + hz].set(by.reshape(-1))
        # y pass-through (identity; no bias, no activation in the kernel)
        W = W.at[r_y:r_y + input_dim, c_y:c_y + input_dim].set(
            jnp.eye(input_dim, dtype=jnp.float32))
        # u_new columns
        W = W.at[r_u:r_u + ku, c_u:c_u + hu].set(Wt)
        W = W.at[r_1, c_u:c_u + hu].set(bt.reshape(-1))
        # ones column pass-through (padding lanes stay zero)
        W = W.at[r_1, c_1].set(1.0)
        return W

    Ws = []
    Wy1, by1, Wu1, Wt1, bt1 = nxt(), nxt(), nxt(), nxt(), nxt()
    Ws.append(fused_layer(None, Wy1, by1, Wu1, Wt1, bt1))
    for _ in range(num_layer - 1):
        Wz, Wy, by, Wu, Wt, bt = nxt(), nxt(), nxt(), nxt(), nxt(), nxt()
        Ws.append(fused_layer(Wz, Wy, by, Wu, Wt, bt))

    Wzf, Wyf, byf, Wuf = nxt(), nxt(), nxt(), nxt()
    Wf = jnp.zeros((KP, NOUT), jnp.float32)
    Wf = Wf.at[r_z:r_z + hz, :input_dim].set(Wzf)
    Wf = Wf.at[r_y:r_y + input_dim, :input_dim].set(Wyf)
    Wf = Wf.at[r_u:r_u + hu, :input_dim].set(Wuf)
    Wf = Wf.at[r_1, :input_dim].set(byf.reshape(-1))

    w_stack = jnp.stack(Ws, axis=0).astype(jnp.bfloat16)   # [L, KP, KP]
    w_final = Wf.astype(jnp.bfloat16)                       # [KP, NOUT]
    return w_stack, w_final


# ----------------------------------------------------------------------------
# Wrapper
# ----------------------------------------------------------------------------
@functools.partial(jax.jit, static_argnames=(
    "input_dim", "num_distribution", "hidden_u", "hidden_z", "num_layer",
    "h_full_activation"))
def picnn_forward(x, w_stack, w_final, *, input_dim, num_distribution,
                  hidden_u, hidden_z, num_layer, h_full_activation):
    B = x.shape[0]
    nd, hu, hz = num_distribution, hidden_u, hidden_z
    U, K, Ka, KP, NOUT = _dims(input_dim, nd, hu, hz)

    y = x[:, :input_dim]
    u0 = x[:, -nd:]

    # Initial activation [ 0_z | y | u0 (padded to U) | 1 | 0_pad ] in bf16.
    a0 = jnp.concatenate([
        jnp.zeros((B, hz), jnp.bfloat16),
        y.astype(jnp.bfloat16),
        u0.astype(jnp.bfloat16),
        jnp.zeros((B, U - nd), jnp.bfloat16),
        jnp.ones((B, 1), jnp.bfloat16),
        jnp.zeros((B, KP - Ka), jnp.bfloat16),
    ], axis=1)

    # Batch tiling: near-equal tiles (multiple of 16 for bf16 sublane packing),
    # capped at TB_MAX rows; >= 2 (even) tiles when possible so the "parallel"
    # grid axis can be sharded across both v7x TensorCores.
    TB_MAX = 8192
    SUB = 16
    n_tiles = _cdiv(B, TB_MAX)
    if B >= 2 * SUB:
        n_tiles = max(n_tiles, 2)
        if n_tiles % 2:
            n_tiles += 1
    tb = _round_up(_cdiv(B, n_tiles), SUB)
    B_pad = n_tiles * tb
    if B_pad != B:
        a0 = jnp.pad(a0, ((0, B_pad - B), (0, 0)))

    kernel = _make_picnn_kernel(num_layer, hz, input_dim, KP, h_full_activation)

    flops = 2 * B_pad * KP * (num_layer * KP + NOUT)
    bytes_accessed = 2 * (B_pad * KP + num_layer * KP * KP
                          + KP * NOUT + B_pad * NOUT)

    z = pl.pallas_call(
        kernel,
        out_shape=jax.ShapeDtypeStruct((B_pad, NOUT), jnp.bfloat16),
        grid=(n_tiles,),
        in_specs=[
            pl.BlockSpec((tb, KP), lambda i: (i, 0)),
            pl.BlockSpec((num_layer, KP, KP), lambda i: (0, 0, 0)),
            pl.BlockSpec((KP, NOUT), lambda i: (0, 0)),
        ],
        out_specs=pl.BlockSpec((tb, NOUT), lambda i: (i, 0)),
        compiler_params=pltpu.CompilerParams(
            dimension_semantics=("parallel",),
            vmem_limit_bytes=32 * 1024 * 1024),
        cost_estimate=pl.CostEstimate(
            flops=flops, transcendentals=0, bytes_accessed=bytes_accessed),
    )(a0, w_stack, w_final)

    z = z[:B, :input_dim].astype(jnp.float32)
    # Final concat with the original u slice happens outside the kernel.
    return jnp.concatenate([z, u0], axis=1)


# ----------------------------------------------------------------------------
# Pure-JAX reference (raw, un-fused parameters; f32 math)
# ----------------------------------------------------------------------------
def picnn_reference(x, params, *, input_dim, num_distribution, num_layer,
                    h_full_activation):
    act = lambda v: jnp.maximum(v, 0.0)
    y = x[:, :input_dim]
    u0 = x[:, -num_distribution:]
    p = list(params)
    idx = 0

    def nxt():
        nonlocal idx
        r = p[idx]
        idx += 1
        return r

    Wy1, by1, Wu1, Wt1, bt1 = nxt(), nxt(), nxt(), nxt(), nxt()
    z = act(y @ Wy1 + by1 + u0 @ Wu1)
    u = act(u0 @ Wt1 + bt1)
    for _ in range(num_layer - 1):
        Wz, Wy, by, Wu, Wt, bt = nxt(), nxt(), nxt(), nxt(), nxt(), nxt()
        z = act(z @ Wz + y @ Wy + by + u @ Wu)
        u = act(u @ Wt + bt)
    Wzf, Wyf, byf, Wuf = nxt(), nxt(), nxt(), nxt()
    z = z @ Wzf + y @ Wyf + byf + u @ Wuf
    if h_full_activation:
        z = act(z)
    return jnp.concatenate([z, u0], axis=1)


# ----------------------------------------------------------------------------
if __name__ == "__main__":
    input_dim = 16
    num_distribution = 4
    hidden_u = 32
    hidden_z = 32
    num_layer = 3
    h_full_activation = True      # activation = 'relu'

    B = 8
    key = jax.random.PRNGKey(0)
    kx, kp = jax.random.split(key)
    x = jax.random.normal(kx, (B, input_dim + num_distribution), jnp.float32)
    params = make_params(kp, input_dim, num_distribution, hidden_u, hidden_z,
                         num_layer)

    # The kernel runs the MXU in bf16 (f32 accumulation).  For a fair check,
    # quantize params and x to bf16 once and use them for BOTH sides; the
    # remaining difference is only intermediate-activation rounding.
    params_q = [p.astype(jnp.bfloat16).astype(jnp.float32) for p in params]
    x_q = x.astype(jnp.bfloat16).astype(jnp.float32)

    w_stack, w_final = pack_params(
        params_q, input_dim=input_dim, num_distribution=num_distribution,
        hidden_u=hidden_u, hidden_z=hidden_z, num_layer=num_layer)

    out = picnn_forward(x_q, w_stack, w_final,
                        input_dim=input_dim,
                        num_distribution=num_distribution,
                        hidden_u=hidden_u,
                        hidden_z=hidden_z,
                        num_layer=num_layer,
                        h_full_activation=h_full_activation)
    out = jax.block_until_ready(out)

    ref = picnn_reference(x_q, params_q,
                          input_dim=input_dim,
                          num_distribution=num_distribution,
                          num_layer=num_layer,
                          h_full_activation=h_full_activation)

    assert out.shape == (B, input_dim + num_distribution)
    # bf16 activations with f32 accumulation: tolerance relaxed accordingly.
    assert jnp.allclose(out, ref, atol=2e-2, rtol=2e-2), "mismatch vs reference"
    print("KERNEL_OK")
</pallas_src>

<mosaic_0001>
module attributes {stable_mosaic.version = 11 : i64} {
  func.func @kernel(%arg0: i32, %arg1: memref<16x128xbf16, #tpu.memory_space<vmem>>, %arg2: memref<3x128x128xbf16, #tpu.memory_space<vmem>>, %arg3: memref<128x128xbf16, #tpu.memory_space<vmem>>, %arg4: memref<16x128xbf16, #tpu.memory_space<vmem>>) attributes {dimension_semantics = [#tpu.dimension_semantics<parallel>], iteration_bounds = array<i64: 1>, scalar_prefetch = 0 : i64, scratch_operands = 0 : i64, tpu.core_type = #tpu.core_type<tc>, window_params = [{transform_indices = @transform_0, window_bounds = array<i64: 16, 128>}, {pipeline_mode = #tpu.pipeline_mode<synchronous>, transform_indices = @transform_1, window_bounds = array<i64: 3, 128, 128>}, {pipeline_mode = #tpu.pipeline_mode<synchronous>, transform_indices = @transform_2, window_bounds = array<i64: 128, 128>}, {transform_indices = @transform_3, window_bounds = array<i64: 16, 128>}]} {
    %0 = tpu.iota {dimensions = array<i32: 1>} : vector<1x128xi32>
    %c32_i32 = arith.constant 32 : i32
    %1 = vector.broadcast %c32_i32 : i32 to vector<1x128xi32>
    %2 = arith.cmpi sge, %0, %1 : vector<1x128xi32>
    %c48_i32 = arith.constant 48 : i32
    %3 = vector.broadcast %c48_i32 : i32 to vector<1x128xi32>
    %4 = arith.cmpi slt, %0, %3 : vector<1x128xi32>
    %5 = arith.andi %2, %4 : vector<1x128xi1>
    %6 = vector.shape_cast %5 : vector<1x128xi1> to vector<1x128xi1>
    %7 = vector.broadcast %6 : vector<1x128xi1> to vector<16x128xi1>
    %c0 = arith.constant 0 : index
    %c0_0 = arith.constant 0 : index
    %8 = vector.load %arg1[%c0, %c0_0] : memref<16x128xbf16, #tpu.memory_space<vmem>>, vector<16x128xbf16>
    %c0_1 = arith.constant 0 : index
    %c0_2 = arith.constant 0 : index
    %c0_3 = arith.constant 0 : index
    %9 = vector.load %arg2[%c0_1, %c0_2, %c0_3] : memref<3x128x128xbf16, #tpu.memory_space<vmem>>, vector<1x128x128xbf16>
    %10 = vector.shape_cast %9 : vector<1x128x128xbf16> to vector<128x128xbf16>
    %cst = arith.constant dense<0.000000e+00> : vector<16x128xf32>
    %11 = tpu.matmul %8, %10, %cst {dimension_numbers = #tpu.dot_dimension_numbers<[1], [0], [0], [1], [0, 0, 1, 1], [], []>} : vector<16x128xbf16>, vector<128x128xbf16>, vector<16x128xf32> -> vector<16x128xf32>
    %cst_4 = arith.constant 0.000000e+00 : f32
    %12 = vector.broadcast %cst_4 : f32 to vector<16x128xf32>
    %13 = arith.maximumf %11, %12 : vector<16x128xf32>
    %14 = arith.select %7, %11, %13 : vector<16x128xi1>, vector<16x128xf32>
    %15 = arith.truncf %14 : vector<16x128xf32> to vector<16x128xbf16>
    %c1 = arith.constant 1 : index
    %c0_5 = arith.constant 0 : index
    %c0_6 = arith.constant 0 : index
    %16 = vector.load %arg2[%c1, %c0_5, %c0_6] : memref<3x128x128xbf16, #tpu.memory_space<vmem>>, vector<1x128x128xbf16>
    %17 = vector.shape_cast %16 : vector<1x128x128xbf16> to vector<128x128xbf16>
    %cst_7 = arith.constant dense<0.000000e+00> : vector<16x128xf32>
    %18 = tpu.matmul %15, %17, %cst_7 {dimension_numbers = #tpu.dot_dimension_numbers<[1], [0], [0], [1], [0, 0, 1, 1], [], []>} : vector<16x128xbf16>, vector<128x128xbf16>, vector<16x128xf32> -> vector<16x128xf32>
    %cst_8 = arith.constant 0.000000e+00 : f32
    %19 = vector.broadcast %cst_8 : f32 to vector<16x128xf32>
    %20 = arith.maximumf %18, %19 : vector<16x128xf32>
    %21 = arith.select %7, %18, %20 : vector<16x128xi1>, vector<16x128xf32>
    %22 = arith.truncf %21 : vector<16x128xf32> to vector<16x128xbf16>
    %c2 = arith.constant 2 : index
    %c0_9 = arith.constant 0 : index
    %c0_10 = arith.constant 0 : index
    %23 = vector.load %arg2[%c2, %c0_9, %c0_10] : memref<3x128x128xbf16, #tpu.memory_space<vmem>>, vector<1x128x128xbf16>
    %24 = vector.shape_cast %23 : vector<1x128x128xbf16> to vector<128x128xbf16>
    %cst_11 = arith.constant dense<0.000000e+00> : vector<16x128xf32>
    %25 = tpu.matmul %22, %24, %cst_11 {dimension_numbers = #tpu.dot_dimension_numbers<[1], [0], [0], [1], [0, 0, 1, 1], [], []>} : vector<16x128xbf16>, vector<128x128xbf16>, vector<16x128xf32> -> vector<16x128xf32>
    %cst_12 = arith.constant 0.000000e+00 : f32
    %26 = vector.broadcast %cst_12 : f32 to vector<16x128xf32>
    %27 = arith.maximumf %25, %26 : vector<16x128xf32>
    %28 = arith.select %7, %25, %27 : vector<16x128xi1>, vector<16x128xf32>
    %29 = arith.truncf %28 : vector<16x128xf32> to vector<16x128xbf16>
    %c0_13 = arith.constant 0 : index
    %c0_14 = arith.constant 0 : index
    %30 = vector.load %arg3[%c0_13, %c0_14] : memref<128x128xbf16, #tpu.memory_space<vmem>>, vector<128x128xbf16>
    %cst_15 = arith.constant dense<0.000000e+00> : vector<16x128xf32>
    %31 = tpu.matmul %29, %30, %cst_15 {dimension_numbers = #tpu.dot_dimension_numbers<[1], [0], [0], [1], [0, 0, 1, 1], [], []>} : vector<16x128xbf16>, vector<128x128xbf16>, vector<16x128xf32> -> vector<16x128xf32>
    %cst_16 = arith.constant 0.000000e+00 : f32
    %32 = vector.broadcast %cst_16 : f32 to vector<16x128xf32>
    %33 = arith.maximumf %31, %32 : vector<16x128xf32>
    %34 = arith.truncf %33 : vector<16x128xf32> to vector<16x128xbf16>
    %c0_17 = arith.constant 0 : index
    %c0_18 = arith.constant 0 : index
    %35 = vector.load %arg4[%c0_17, %c0_18] : memref<16x128xbf16, #tpu.memory_space<vmem>>, vector<16x128xbf16>
    tpu.vector_store %arg4[%c0_17, %c0_18], %34 {strides = array<i32>} : memref<16x128xbf16, #tpu.memory_space<vmem>>, vector<16x128xbf16>,
    return
  }
  func.func @transform_0(%arg0: i32) -> (i32, i32) {
    %c0_i32 = arith.constant 0 : i32
    %c0_i32_0 = arith.constant 0 : i32
    return %arg0, %c0_i32 : i32, i32
  }
  func.func @transform_1(%arg0: i32) -> (i32, i32, i32) {
    %c0_i32 = arith.constant 0 : i32
    %c0_i32_0 = arith.constant 0 : i32
    %c0_i32_1 = arith.constant 0 : i32
    %c0_i32_2 = arith.constant 0 : i32
    return %c0_i32, %c0_i32_0, %c0_i32_1 : i32, i32, i32
  }
  func.func @transform_2(%arg0: i32) -> (i32, i32) {
    %c0_i32 = arith.constant 0 : i32
    %c0_i32_0 = arith.constant 0 : i32
    %c0_i32_1 = arith.constant 0 : i32
    return %c0_i32, %c0_i32_0 : i32, i32
  }
  func.func @transform_3(%arg0: i32) -> (i32, i32) {
    %c0_i32 = arith.constant 0 : i32
    %c0_i32_0 = arith.constant 0 : i32
    return %arg0, %c0_i32 : i32, i32
  }
}

</mosaic_0001>

<bundles_post_ra>
// kernel: picnn_forward.1
= control target key start
LH: loop header
LB: loop body
LE: loop exit
PB: predicated region body
PF: predicated region fallthrough
CT: control target
= control target key end

     0   :  { %8 = vsyncpa [#allocation3], 0  ;;  %s718_s12 = smov [#allocation2]   ;;  %s841_s0 = inlined_call_operand.vmem [shape: bf16[16,128], index: 0, kind: input, shape index: {}]   ;;  %s842_s1 = inlined_call_operand.hbm [shape: bf16[3,128,128], index: 1, kind: input, shape index: {}]   ;;  %s843_s2 = inlined_call_operand.vmem [shape: bf16[128,128], index: 2, kind: input, shape index: {}]   ;;  %s844_s3 = inlined_call_operand.vmem [shape: bf16[16,128], index: 3, kind: output, shape index: {}]  }
   0x1   :  { %s16_s13 = sshll.u32 %s718_s12, 4  ;;  %s694_s16 = scalar_lea.hbm %s842_s1, 3072  ;;  %s17_s13 = int_to_ptr.vmem [resolvable:$true] %s16_s13 }
   0x2   :  { %p695_p0 = scmp.ne.s32.totalorder %s842_s1, %s694_s16  ;;  %p698_p1 = scmp.lt.u32.totalorder %s694_s16, %s842_s1 }
   0x4   :  { %p700_p2 = pnand %p698_p1, %p695_p0 }
   0x6   :  { %703 = shalt.err (!%p700_p2)
}
   0x7   :  { %s704_s21 = scalar_lea.vmem %s17_s13, 3072  ;;  %p709_p4 = scmp.lt.s32.totalorder %s17_s13, %s17_s13 }
   0x8   :  { %p705_p3 = scmp.ne.s32.totalorder %s17_s13, %s704_s21  ;;  %p710_p5 = scmp.lt.s32.totalorder %s704_s21, %s704_s21 }
   0xa   :  { %p711_p6 = por %p710_p5, %p709_p4 }
   0xc   :  { %p712_p7 = pnand %p711_p6, %p705_p3 }
   0xe   :  { %715 = shalt.err (!%p712_p7)
}
   0xf   :  { %s719_s22 = smov 64   ;;  %s720_s23 = smov 4  }
  0x10   :  { %22 = dma.hbm_to_vmem [thread:$0]  %s842_s1, 3072, %s17_s13, [#allocation3], %s719_s22, %s719_s22, %s720_s23  }
  0x11   :  { %716 = dma.done.wait [#allocation3], 3072  }
  0x12   :  { %717 = vsyncadd [#allocation3], 4294964224  ;;  %v721_v0 = vmov 0.0   ;;  %vm722_vm0 = vmmov 0   ;;  %v661_v1 = vld [vmem:[#allocation2] sm:$0xff]   ;;  %v662_v2 = vld [vmem:[#allocation2 + $0x8] sm:$0xff]   ;;  %v29_v24 = vlaneseq }
  0x13   :  { %576 = vmatprep.subr.bf16.mxu0 %v721_v0  ;;  %592 = vmatprep.mubr.msk.bf16.mxu0 %vm722_vm0, %v721_v0  ;;  %v663_v3 = vld [vmem:[#allocation2 + $0x10] sm:$0xff]   ;;  %v670_v4 = vld [vmem:[#allocation2 + $0x40] sm:$0xff]   ;;  %v664_v5 = vld [vmem:[#allocation2 + $0x18] sm:$0xff]  }
  0x14   :  { %596 = vmatprep.subr.bf16.mxu1 %v721_v0  ;;  %612 = vmatprep.mubr.msk.bf16.mxu1 %vm722_vm0, %v721_v0  ;;  %v671_v6 = vld [vmem:[#allocation2 + $0x48] sm:$0xff]   ;;  %v665_v7 = vld [vmem:[#allocation2 + $0x20] sm:$0xff]   ;;  %v672_v8 = vld [vmem:[#allocation2 + $0x50] sm:$0xff]   ;;  %v30_v25 = vand.u32 127, %v29_v24 }
  0x15   :  { %577 = vmatpush3.bf16.msra.mxu0 %v661_v1  ;;  %597 = vmatpush3.bf16.msra.mxu1 %v670_v4  ;;  %v666_v9 = vld [vmem:[#allocation2 + $0x28] sm:$0xff]   ;;  %v673_v10 = vld [vmem:[#allocation2 + $0x58] sm:$0xff]   ;;  %v667_v11 = vld [vmem:[#allocation2 + $0x30] sm:$0xff]  }
  0x16   :  { %578 = vmatprep.subr.bf16.mxu0 %v721_v0  ;;  %598 = vmatprep.subr.bf16.mxu1 %v721_v0  ;;  %v674_v12 = vld [vmem:[#allocation2 + $0x60] sm:$0xff]   ;;  %v668_v13 = vld [vmem:[#allocation2 + $0x38] sm:$0xff]   ;;  %v675_v14 = vld [vmem:[#allocation2 + $0x68] sm:$0xff]   ;;  %vm31_vm1 = vcmp.ge.s32.totalorder %v30_v25, 32  ;;  %vm32_vm2 = vcmp.lt.s32.totalorder %v30_v25, 48 }
  0x17   :  { %v669_v15 = vld [vmem:[%s841_s0] sm:$0xff]   ;;  %v676_v16 = vld [vmem:[#allocation2 + $0x70] sm:$0xff]   ;;  %v677_v17 = vld [vmem:[#allocation2 + $0x78] sm:$0xff]  }
  0x18   :  { %v678_v18 = vld [vmem:[#allocation2 + $0x80] sm:$0xff]   ;;  %v679_v19 = vld [vmem:[#allocation2 + $0x88] sm:$0xff]   ;;  %v680_v20 = vld [vmem:[#allocation2 + $0x90] sm:$0xff]  }
  0x19   :  { %579 = vmatpush3.bf16.msra.mxu0 %v662_v2  ;;  %599 = vmatpush3.bf16.msra.mxu1 %v671_v6  ;;  %v681_v21 = vld [vmem:[#allocation2 + $0x98] sm:$0xff]   ;;  %v682_v22 = vld [vmem:[#allocation2 + $0xa0] sm:$0xff]   ;;  %v683_v23 = vld [vmem:[#allocation2 + $0xa8] sm:$0xff]  }
  0x1a   :  { %580 = vmatprep.subr.bf16.mxu0 %v721_v0  ;;  %600 = vmatprep.subr.bf16.mxu1 %v721_v0  ;;  %vm788_vm3 = vmand %vm31_vm1, %vm32_vm2  ;;  %v684_v36 = vld [vmem:[#allocation2 + $0xb0] sm:$0xff]   ;;  %v685_v37 = vld [vmem:[#allocation2 + $0xb8] sm:$0xff]  }
  0x1b   :  { %v686_v38 = vld [vmem:[%s843_s2] sm:$0xff]   ;;  %v687_v39 = vld [vmem:[%s843_s2 + $0x8] sm:$0xff]   ;;  %v688_v40 = vld [vmem:[%s843_s2 + $0x10] sm:$0xff]  }
  0x1c   :  { %v689_v41 = vld [vmem:[%s843_s2 + $0x18] sm:$0xff]   ;;  %v690_v42 = vld [vmem:[%s843_s2 + $0x20] sm:$0xff]   ;;  %v691_v43 = vld [vmem:[%s843_s2 + $0x28] sm:$0xff]  }
  0x1d   :  { %581 = vmatpush3.bf16.msra.mxu0 %v663_v3  ;;  %601 = vmatpush3.bf16.msra.mxu1 %v672_v8  ;;  %v692_v53 = vld [vmem:[%s843_s2 + $0x30] sm:$0xff]   ;;  %v693_v54 = vld [vmem:[%s843_s2 + $0x38] sm:$0xff]  }
  0x1e   :  { %582 = vmatprep.subr.bf16.mxu0 %v721_v0  ;;  %602 = vmatprep.subr.bf16.mxu1 %v721_v0 }
  0x21   :  { %583 = vmatpush3.bf16.msra.mxu0 %v664_v5  ;;  %603 = vmatpush3.bf16.msra.mxu1 %v673_v10 }
  0x22   :  { %584 = vmatprep.subr.bf16.mxu0 %v721_v0  ;;  %604 = vmatprep.subr.bf16.mxu1 %v721_v0 }
  0x25   :  { %585 = vmatpush3.bf16.msra.mxu0 %v665_v7  ;;  %605 = vmatpush3.bf16.msra.mxu1 %v674_v12 }
  0x26   :  { %586 = vmatprep.subr.bf16.mxu0 %v721_v0  ;;  %606 = vmatprep.subr.bf16.mxu1 %v721_v0 }
  0x29   :  { %587 = vmatpush3.bf16.msra.mxu0 %v666_v9  ;;  %607 = vmatpush3.bf16.msra.mxu1 %v675_v14 }
  0x2a   :  { %588 = vmatprep.subr.bf16.mxu0 %v721_v0  ;;  %608 = vmatprep.subr.bf16.mxu1 %v721_v0 }
  0x2d   :  { %589 = vmatpush3.bf16.msra.mxu0 %v667_v11  ;;  %609 = vmatpush3.bf16.msra.mxu1 %v676_v16 }
  0x2e   :  { %590 = vmatprep.subr.bf16.mxu0 %v721_v0  ;;  %610 = vmatprep.subr.bf16.mxu1 %v721_v0 }
  0x31   :  { %591 = vmatpush3.bf16.msra.mxu0 %v668_v13  ;;  %611 = vmatpush3.bf16.msra.mxu1 %v677_v17 }
  0x32   :  { %616 = vmatprep.subr.bf16.mxu0 %v721_v0  ;;  %636 = vmatprep.subr.bf16.mxu1 %v721_v0 }
  0x34   :  { %593 = vmatmul.mubr.bf16.vlgmr.msra.gmra.mrb[0].mxu0 %v669_v15 }
  0x35   :  { %632 = vmatprep.mubr.msk.bf16.mxu0 %vm722_vm0, %v721_v0  ;;  %617 = vmatpush3.bf16.msra.mxu0 %v678_v18 }
  0x36   :  { %618 = vmatprep.subr.bf16.mxu0 %v721_v0 }
  0x39   :  { %619 = vmatpush3.bf16.msra.mxu0 %v679_v19 }
  0x3a   :  { %620 = vmatprep.subr.bf16.mxu0 %v721_v0 }
  0x3d   :  { %621 = vmatpush3.bf16.msra.mxu0 %v680_v20 }
  0x3e   :  { %622 = vmatprep.subr.bf16.mxu0 %v721_v0 }
  0x41   :  { %623 = vmatpush3.bf16.msra.mxu0 %v681_v21 }
  0x42   :  { %624 = vmatprep.subr.bf16.mxu0 %v721_v0 }
  0x45   :  { %625 = vmatpush3.bf16.msra.mxu0 %v682_v22 }
  0x46   :  { %626 = vmatprep.subr.bf16.mxu0 %v721_v0 }
  0x49   :  { %627 = vmatpush3.bf16.msra.mxu0 %v683_v23 }
  0x4a   :  { %628 = vmatprep.subr.bf16.mxu0 %v721_v0 }
  0x4d   :  { %629 = vmatpush3.bf16.msra.mxu0 %v684_v36 }
  0x4e   :  { %630 = vmatprep.subr.bf16.mxu0 %v721_v0 }
  0x51   :  { %631 = vmatpush3.bf16.msra.mxu0 %v685_v37 }
 0x107   :  { %v142_v26 = vpop.f32.mrb[0].mxu0 }
 0x108   :  { %v149_v27 = vmax.f32 %v142_v26, 0.0  ;;  %v594_v28 = vpop.f32.mrb[1].mxu0 }
 0x109   :  { %v145_v30 = vpop.f32.mrb[2].mxu0 }
 0x10a   :  { %v150_v31 = vmax.f32 %v145_v30, 0.0  ;;  %v595_v32 = vpop.f32.mrb[3].mxu0  ;;  %v151_v33 = vsel %vm788_vm3, %v142_v26, %v149_v27 }
 0x10c   :  { %v152_v34 = vsel %vm788_vm3, %v145_v30, %v150_v31 }
 0x10d   :  { %v153_v35 = vpack.c.bf16 %v152_v34, %v151_v33 }
 0x10f   :  { %613 = vmatmul.mubr.bf16.vlgmr.msra.gmra.mrb[0].mxu1 %v153_v35 }
 0x110   :  { %652 = vmatprep.mubr.msk.bf16.mxu1 %vm722_vm0, %v721_v0  ;;  %637 = vmatpush3.bf16.msra.mxu1 %v686_v38 }
 0x111   :  { %638 = vmatprep.subr.bf16.mxu1 %v721_v0 }
 0x114   :  { %639 = vmatpush3.bf16.msra.mxu1 %v687_v39 }
 0x115   :  { %640 = vmatprep.subr.bf16.mxu1 %v721_v0 }
 0x118   :  { %641 = vmatpush3.bf16.msra.mxu1 %v688_v40 }
 0x119   :  { %642 = vmatprep.subr.bf16.mxu1 %v721_v0 }
 0x11c   :  { %643 = vmatpush3.bf16.msra.mxu1 %v689_v41 }
 0x11d   :  { %644 = vmatprep.subr.bf16.mxu1 %v721_v0 }
 0x120   :  { %645 = vmatpush3.bf16.msra.mxu1 %v690_v42 }
 0x121   :  { %646 = vmatprep.subr.bf16.mxu1 %v721_v0 }
 0x124   :  { %647 = vmatpush3.bf16.msra.mxu1 %v691_v43 }
 0x125   :  { %648 = vmatprep.subr.bf16.mxu1 %v721_v0 }
 0x128   :  { %649 = vmatpush3.bf16.msra.mxu1 %v692_v53 }
 0x129   :  { %650 = vmatprep.subr.bf16.mxu1 %v721_v0 }
 0x12c   :  { %651 = vmatpush3.bf16.msra.mxu1 %v693_v54 }
 0x1e2   :  { %v253_v44 = vpop.f32.mrb[0].mxu1 }
 0x1e3   :  { %v260_v45 = vmax.f32 %v253_v44, 0.0  ;;  %v614_v46 = vpop.f32.mrb[1].mxu1 }
 0x1e4   :  { %v256_v47 = vpop.f32.mrb[2].mxu1 }
 0x1e5   :  { %v261_v48 = vmax.f32 %v256_v47, 0.0  ;;  %v615_v49 = vpop.f32.mrb[3].mxu1  ;;  %v262_v50 = vsel %vm788_vm3, %v253_v44, %v260_v45 }
 0x1e7   :  { %v263_v51 = vsel %vm788_vm3, %v256_v47, %v261_v48 }
 0x1e8   :  { %v264_v52 = vpack.c.bf16 %v263_v51, %v262_v50 }
 0x1ea   :  { %633 = vmatmul.mubr.bf16.vlgmr.msra.gmra.mrb[4].mxu0 %v264_v52 }
 0x2bd   :  { %v364_v55 = vpop.f32.mrb[4].mxu0 }
 0x2be   :  { %v371_v56 = vmax.f32 %v364_v55, 0.0  ;;  %v634_v57 = vpop.f32.mrb[5].mxu0 }
 0x2bf   :  { %v367_v58 = vpop.f32.mrb[6].mxu0 }
 0x2c0   :  { %v372_v59 = vmax.f32 %v367_v58, 0.0  ;;  %v635_v60 = vpop.f32.mrb[7].mxu0  ;;  %v373_v61 = vsel %vm788_vm3, %v364_v55, %v371_v56 }
 0x2c2   :  { %v374_v62 = vsel %vm788_vm3, %v367_v58, %v372_v59 }
 0x2c3   :  { %v375_v63 = vpack.c.bf16 %v374_v62, %v373_v61 }
 0x2c5   :  { %653 = vmatmul.mubr.bf16.vlgmr.msra.gmra.mrb[4].mxu1 %v375_v63 }
 0x398   :  { %v474_v0 = vpop.f32.mrb[4].mxu1 }
 0x399   :  { %v654_v1 = vpop.f32.mrb[5].mxu1  ;;  %v481_v3 = vmax.f32 %v474_v0, 0.0 }
 0x39a   :  { %v477_v2 = vpop.f32.mrb[6].mxu1 }
 0x39b   :  { %v482_v4 = vmax.f32 %v477_v2, 0.0  ;;  %v655_v5 = vpop.f32.mrb[7].mxu1 }
 0x39d   :  { %v538_v6 = vpack.c.bf16 %v482_v4, %v481_v3 }
 0x39f   :  { %539 = vst [vmem:[%s844_s3] sm:$0xff] %v538_v6  }
 0x3a0   :  { %497 = vsyncpa [#allocation3], 1 }

</bundles_post_ra>
